<compile_context>
chip_gen: v5e
topology: v5e:2x2
jax: 0.10.0
libtpu: 0.0.40
codegen_flags: <defaults>
</compile_context>

<pallas_src>
import math

import jax
import jax.numpy as jnp
from jax.experimental import pallas as pl
from jax.experimental.pallas import tpu as pltpu


def _round_up(x: int, m: int) -> int:
    return (x + m - 1) // m * m


def _vmem_capacity_bytes() -> int:
    try:
        return int(pltpu.get_tpu_info().vmem_capacity_bytes)
    except Exception:
        return 64 * 1024 * 1024  # conservative (v7x per-TensorCore)


def _pick_tile(dim: int, max_tile: int, align: int) -> int:
    """Largest tile <= max_tile (multiple of `align`) minimizing padded work."""
    dim_r = _round_up(dim, align)
    max_tile = max(align, (max_tile // align) * align)
    if dim_r <= max_tile:
        return dim_r
    best_t, best_pad = align, None
    for t in range(align, max_tile + 1, align):
        pad = _round_up(dim_r, t) - dim_r
        if best_pad is None or pad < best_pad or (pad == best_pad and t > best_t):
            best_t, best_pad = t, pad
    return best_t


def _tile_footprint_bytes(tm, tn, tk, in_isz, out_isz, use_scratch) -> int:
    # Double-buffered x, w, bias, out tiles (+ optional f32 accumulator).
    dbuf = 2 * (tm * tk * in_isz + tk * tn * in_isz + tn * 4 + tm * tn * out_isz)
    return dbuf + (tm * tn * 4 if use_scratch else 0)


def _linear_kernel_accout(x_ref, w_ref, b_ref, o_ref):
    """f32 output: accumulate directly into o_ref (no scratch)."""
    k = pl.program_id(2)

    @pl.when(k == 0)
    def _():
        o_ref[...] = jnp.zeros_like(o_ref)

    o_ref[...] += jnp.dot(x_ref[...], w_ref[...],
                          preferred_element_type=jnp.float32)

    @pl.when(k == pl.num_programs(2) - 1)
    def _():
        o_ref[...] += b_ref[...].astype(o_ref.dtype)


def _linear_kernel_scratch(x_ref, w_ref, b_ref, o_ref, acc_ref):
    """Narrow output dtype: f32 VMEM accumulator, cast in finalize."""
    k = pl.program_id(2)

    @pl.when(k == 0)
    def _():
        acc_ref[...] = jnp.zeros_like(acc_ref)

    acc_ref[...] += jnp.dot(x_ref[...], w_ref[...],
                            preferred_element_type=jnp.float32)

    @pl.when(k == pl.num_programs(2) - 1)
    def _():
        o_ref[...] = (acc_ref[...] + b_ref[...].astype(jnp.float32)).astype(o_ref.dtype)


def linear_regression_forward(x, weight, bias, *, compute_dtype=jnp.bfloat16,
                              tm=None, tn=None, tk=None):
    """y = x @ weight.T + bias via a tiled Pallas kernel.

    x:      (B, D_in)
    weight: (D_out, D_in)   -- native PyTorch nn.Linear layout
    bias:   (D_out,)
    """
    B, D_in = x.shape
    D_out, D_in_w = weight.shape
    assert D_in == D_in_w, "weight shape mismatch"

    out_dtype = x.dtype
    in_isz = jnp.dtype(compute_dtype).itemsize
    out_isz = jnp.dtype(out_dtype).itemsize
    use_scratch = out_dtype != jnp.float32

    # bf16 packs 2 rows/sublane -> (16, 128) minimum tile on the second-minor dim.
    sub_align = 16 if in_isz == 2 else (32 if in_isz == 1 else 8)
    lane = 128

    # Generation-aware VMEM budget and tile ceilings.
    vmem_cap = _vmem_capacity_bytes()
    vmem_limit = (3 * vmem_cap) // 4            # ~96 MiB v5e/v6e, ~48 MiB v7x
    big_vmem = vmem_cap >= 96 * 1024 * 1024
    tm_max = tm if tm is not None else (1024 if big_vmem else 512)
    tn_max = tn if tn is not None else (1024 if big_vmem else 512)
    tk_max = tk if tk is not None else 1024

    tm = _pick_tile(B, tm_max, sub_align)       # sublane dim of x / out tiles
    tn = _pick_tile(D_out, tn_max, lane)        # lane dim of w / bias / out tiles
    tk = _pick_tile(D_in, tk_max, lane)         # lane dim of x, sublane dim of w

    # Safety net: shrink tiles if the double-buffered footprint exceeds budget.
    budget = max(vmem_limit - (4 << 20), 16 << 20)
    while _tile_footprint_bytes(tm, tn, tk, in_isz, out_isz, use_scratch) > budget:
        if tk > lane and tk >= max(tm, tn):
            tk = max(lane, (tk // 2) // lane * lane)
        elif tn > lane and tn >= tm:
            tn = max(lane, (tn // 2) // lane * lane)
        elif tm > sub_align:
            tm = max(sub_align, (tm // 2) // sub_align * sub_align)
        else:
            break

    Mp = _round_up(B, tm)
    Np = _round_up(D_out, tn)
    Kp = _round_up(D_in, tk)

    # Cast (and one-time transpose of W) in the wrapper; pad per-dim only when
    # actually required. XLA fuses pad+cast+transpose into a single pass.
    x_p = x.astype(compute_dtype)
    if Mp != B or Kp != D_in:
        x_p = jnp.pad(x_p, ((0, Mp - B), (0, Kp - D_in)))

    w_p = weight.T.astype(compute_dtype)        # (D_in, D_out): MXU-native feed
    if Kp != D_in or Np != D_out:
        w_p = jnp.pad(w_p, ((0, Kp - D_in), (0, Np - D_out)))

    b_p = bias.reshape(1, D_out).astype(jnp.float32)
    if Np != D_out:
        b_p = jnp.pad(b_p, ((0, 0), (0, Np - D_out)))

    grid = (Mp // tm, Np // tn, Kp // tk)

    # Realistic HBM traffic: x re-read per N-tile, W re-read per M-tile.
    bytes_accessed = (
        Mp * Kp * in_isz * (Np // tn)
        + Kp * Np * in_isz * (Mp // tm)
        + Np * 4 * (Mp // tm)
        + Mp * Np * out_isz
    )

    kernel = _linear_kernel_scratch if use_scratch else _linear_kernel_accout
    scratch = [pltpu.VMEM((tm, tn), jnp.float32)] if use_scratch else []

    out = pl.pallas_call(
        kernel,
        out_shape=jax.ShapeDtypeStruct((Mp, Np), out_dtype),
        grid_spec=pltpu.PrefetchScalarGridSpec(
            num_scalar_prefetch=0,
            grid=grid,
            in_specs=[
                pl.BlockSpec((tm, tk), lambda i, j, k: (i, k)),   # x        (Mp, Kp)
                pl.BlockSpec((tk, tn), lambda i, j, k: (k, j)),   # weight^T (Kp, Np)
                pl.BlockSpec((1, tn), lambda i, j, k: (0, j)),    # bias     (1,  Np)
            ],
            out_specs=pl.BlockSpec((tm, tn), lambda i, j, k: (i, j)),
            scratch_shapes=scratch,
        ),
        compiler_params=pltpu.CompilerParams(
            dimension_semantics=("parallel", "parallel", "arbitrary"),
            vmem_limit_bytes=vmem_limit,
        ),
        cost_estimate=pl.CostEstimate(
            flops=2 * Mp * Np * Kp,
            transcendentals=0,
            bytes_accessed=bytes_accessed,
        ),
    )(x_p, w_p, b_p)

    if Mp != B or Np != D_out:
        out = out[:B, :D_out]
    return out


if __name__ == "__main__":
    # Small demo shapes consistent with Linear(input_dim, output_dim).
    batch = 8
    input_dim = 32
    output_dim = 16

    key = jax.random.PRNGKey(0)
    k_x, k_w, k_b = jax.random.split(key, 3)

    # Mimic torch nn.Linear default init: uniform(-1/sqrt(in), 1/sqrt(in)).
    bound = 1.0 / math.sqrt(input_dim)
    weight = jax.random.uniform(
        k_w, (output_dim, input_dim), jnp.float32, minval=-bound, maxval=bound
    )
    bias = jax.random.uniform(
        k_b, (output_dim,), jnp.float32, minval=-bound, maxval=bound
    )
    x = jax.random.normal(k_x, (batch, input_dim), jnp.float32)

    y = linear_regression_forward(x, weight, bias)
    y = jax.block_until_ready(y)
    assert y.shape == (batch, output_dim)

    # Reference with the same bf16 operand precision (f32 accumulation).
    xb = x.astype(jnp.bfloat16).astype(jnp.float32)
    wb = weight.astype(jnp.bfloat16).astype(jnp.float32)
    y_ref_bf16 = xb @ wb.T + bias
    assert jnp.allclose(y, y_ref_bf16, atol=1e-4, rtol=1e-4)

    # Sanity check against the exact f32 reference (bf16 operand tolerance).
    y_ref_f32 = x @ weight.T + bias
    assert jnp.allclose(y, y_ref_f32, atol=3e-2, rtol=3e-2)

    print("KERNEL_OK")
</pallas_src>

<mosaic_0001>
module attributes {stable_mosaic.version = 11 : i64} {
  func.func @_linear_kernel_accout(%arg0: i32, %arg1: i32, %arg2: i32, %arg3: memref<16x128xbf16, #tpu.memory_space<vmem>>, %arg4: memref<128x128xbf16, #tpu.memory_space<vmem>>, %arg5: memref<1x128xf32, #tpu.memory_space<vmem>>, %arg6: memref<16x128xf32, #tpu.memory_space<vmem>>) attributes {dimension_semantics = [#tpu.dimension_semantics<parallel>, #tpu.dimension_semantics<parallel>, #tpu.dimension_semantics<arbitrary>], iteration_bounds = array<i64: 1, 1, 1>, scalar_prefetch = 0 : i64, scratch_operands = 0 : i64, tpu.core_type = #tpu.core_type<tc>, window_params = [{transform_indices = @transform_0, window_bounds = array<i64: 16, 128>}, {transform_indices = @transform_1, window_bounds = array<i64: 128, 128>}, {transform_indices = @transform_2, window_bounds = array<i64: 1, 128>}, {transform_indices = @transform_3, window_bounds = array<i64: 16, 128>}]} {
    %c0_i32 = arith.constant 0 : i32
    %0 = arith.cmpi eq, %arg2, %c0_i32 : i32
    %1 = arith.extui %0 : i1 to i32
    %c0_i32_0 = arith.constant 0 : i32
    %2 = arith.cmpi ne, %1, %c0_i32_0 : i32
    scf.if %2 {
      %cst_10 = arith.constant 0.000000e+00 : f32
      %12 = vector.broadcast %cst_10 : f32 to vector<16x128xf32>
      %c0_11 = arith.constant 0 : index
      %c0_12 = arith.constant 0 : index
      %13 = vector.load %arg6[%c0_11, %c0_12] : memref<16x128xf32, #tpu.memory_space<vmem>>, vector<16x128xf32>
      tpu.vector_store %arg6[%c0_11, %c0_12], %12 {strides = array<i32>} : memref<16x128xf32, #tpu.memory_space<vmem>>, vector<16x128xf32>,
    } else {
    }
    %c0 = arith.constant 0 : index
    %c0_1 = arith.constant 0 : index
    %3 = vector.load %arg6[%c0, %c0_1] : memref<16x128xf32, #tpu.memory_space<vmem>>, vector<16x128xf32>
    %c0_2 = arith.constant 0 : index
    %c0_3 = arith.constant 0 : index
    %4 = vector.load %arg3[%c0_2, %c0_3] : memref<16x128xbf16, #tpu.memory_space<vmem>>, vector<16x128xbf16>
    %c0_4 = arith.constant 0 : index
    %c0_5 = arith.constant 0 : index
    %5 = vector.load %arg4[%c0_4, %c0_5] : memref<128x128xbf16, #tpu.memory_space<vmem>>, vector<128x128xbf16>
    %cst = arith.constant dense<0.000000e+00> : vector<16x128xf32>
    %6 = tpu.matmul %4, %5, %cst {dimension_numbers = #tpu.dot_dimension_numbers<[1], [0], [0], [1], [0, 0, 1, 1], [], []>} : vector<16x128xbf16>, vector<128x128xbf16>, vector<16x128xf32> -> vector<16x128xf32>
    %7 = arith.addf %3, %6 : vector<16x128xf32>
    %c0_6 = arith.constant 0 : index
    %c0_7 = arith.constant 0 : index
    %8 = vector.load %arg6[%c0_6, %c0_7] : memref<16x128xf32, #tpu.memory_space<vmem>>, vector<16x128xf32>
    tpu.vector_store %arg6[%c0_6, %c0_7], %7 {strides = array<i32>} : memref<16x128xf32, #tpu.memory_space<vmem>>, vector<16x128xf32>,
    %c0_i32_8 = arith.constant 0 : i32
    %9 = arith.cmpi eq, %arg2, %c0_i32_8 : i32
    %10 = arith.extui %9 : i1 to i32
    %c0_i32_9 = arith.constant 0 : i32
    %11 = arith.cmpi ne, %10, %c0_i32_9 : i32
    scf.if %11 {
      %c0_10 = arith.constant 0 : index
      %c0_11 = arith.constant 0 : index
      %12 = vector.load %arg6[%c0_10, %c0_11] : memref<16x128xf32, #tpu.memory_space<vmem>>, vector<16x128xf32>
      %c0_12 = arith.constant 0 : index
      %c0_13 = arith.constant 0 : index
      %13 = vector.load %arg5[%c0_12, %c0_13] : memref<1x128xf32, #tpu.memory_space<vmem>>, vector<1x128xf32>
      %14 = vector.broadcast %13 : vector<1x128xf32> to vector<16x128xf32>
      %15 = arith.addf %12, %14 : vector<16x128xf32>
      %c0_14 = arith.constant 0 : index
      %c0_15 = arith.constant 0 : index
      %16 = vector.load %arg6[%c0_14, %c0_15] : memref<16x128xf32, #tpu.memory_space<vmem>>, vector<16x128xf32>
      tpu.vector_store %arg6[%c0_14, %c0_15], %15 {strides = array<i32>} : memref<16x128xf32, #tpu.memory_space<vmem>>, vector<16x128xf32>,
    } else {
    }
    return
  }
  func.func @transform_0(%arg0: i32, %arg1: i32, %arg2: i32) -> (i32, i32) {
    %c0_i32 = arith.constant 0 : i32
    return %arg0, %arg2 : i32, i32
  }
  func.func @transform_1(%arg0: i32, %arg1: i32, %arg2: i32) -> (i32, i32) {
    %c0_i32 = arith.constant 0 : i32
    return %arg2, %arg1 : i32, i32
  }
  func.func @transform_2(%arg0: i32, %arg1: i32, %arg2: i32) -> (i32, i32) {
    %c0_i32 = arith.constant 0 : i32
    %c0_i32_0 = arith.constant 0 : i32
    return %c0_i32, %arg1 : i32, i32
  }
  func.func @transform_3(%arg0: i32, %arg1: i32, %arg2: i32) -> (i32, i32) {
    %c0_i32 = arith.constant 0 : i32
    return %arg0, %arg1 : i32, i32
  }
}

</mosaic_0001>

<bundles_post_ra>
// kernel: tpu_custom_call.1
= control target key start
LH: loop header
LB: loop body
LE: loop exit
PB: predicated region body
PF: predicated region fallthrough
CT: control target
= control target key end

     0   :  { %8 = vsyncpa [#allocation3], 0  ;;  %s349_s0 = inlined_call_operand.hbm [shape: bf16[16,128], index: 0, kind: input, shape index: {}]   ;;  %s350_s1 = inlined_call_operand.hbm [shape: bf16[128,128], index: 1, kind: input, shape index: {}]   ;;  %s351_s2 = inlined_call_operand.vmem [shape: f32[1,128], index: 2, kind: input, shape index: {}]   ;;  %s352_s3 = inlined_call_operand.hbm [shape: f32[16,128], index: 3, kind: output, shape index: {}]  }
   0x1   :  { %9 = vsyncpa [#allocation6], 0 }
   0x2   :  { %10 = vsyncpa [#allocation4], 0  ;;  %s15_s14 = sshll.u32 %s349_s0, 4  ;;  %s310_s15 = smov [#allocation2]   ;;  %s16_s14 = int_to_ptr.hbm [resolvable:$true] %s15_s14 }
   0x3   :  { %s17_s16 = sshll.u32 %s310_s15, 4  ;;  %s28_s19 = sshll.u32 %s350_s1, 4  ;;  %s18_s16 = int_to_ptr.vmem [resolvable:$true] %s17_s16  ;;  %s29_s19 = int_to_ptr.hbm [resolvable:$true] %s28_s19 }
   0x4   :  { %s311_s20 = smov 64   ;;  %s312_s21 = smov 4  }
   0x5   :  { %23 = dma.hbm_to_vmem [thread:$0]  %s16_s14, 128, %s18_s16, [#allocation3], %s311_s20, %s311_s20, %s312_s21  }
   0x6   :  { %s313_s22 = smov [#allocation5]  }
   0x7   :  { %s30_s23 = sshll.u32 %s313_s22, 4  ;;  %s31_s23 = int_to_ptr.vmem [resolvable:$true] %s30_s23 }
   0x8   :  { %36 = dma.hbm_to_vmem [thread:$0]  %s29_s19, 1024, %s31_s23, [#allocation6], %s311_s20, %s311_s20, %s312_s21  }
   0x9   :  { %304 = dma.done.wait [#allocation3], 128  }
   0xa   :  { %305 = vsyncadd [#allocation3], 4294967168 }
   0xb   :  { %306 = dma.done.wait [#allocation6], 1024  }
   0xc   :  { %307 = vsyncadd [#allocation6], 4294966272  ;;  %v222_v0 = vld [vmem:[#allocation5 + $0x38] sm:$0xff]  ;;  %v221_v1 = vld [vmem:[#allocation5 + $0x30] sm:$0xff]  ;;  %s314_s24 = smov [#allocation7]   ;;  %s164_s28 = sshll.u32 %s352_s3, 4  ;;  %s165_s28 = int_to_ptr.hbm [resolvable:$true] %s164_s28 }
   0xd   :  { %127 = vmatpush.bf16.msra.mxu0 %v222_v0  ;;  %v220_v2 = vld [vmem:[#allocation5 + $0x28] sm:$0xff]  ;;  %v219_v3 = vld [vmem:[#allocation5 + $0x20] sm:$0xff]  ;;  %v218_v4 = vld [vmem:[#allocation5 + $0x18] sm:$0xff]  ;;  %s162_s25 = sshll.u32 %s314_s24, 4  ;;  %s315_s29 = smov 128   ;;  %s163_s25 = int_to_ptr.vmem [resolvable:$true] %s162_s25 }
   0xe   :  { %v217_v5 = vld [vmem:[#allocation5 + $0x10] sm:$0xff]  ;;  %v216_v6 = vld [vmem:[#allocation5 + $0x8] sm:$0xff]  ;;  %v215_v7 = vld [vmem:[#allocation5] sm:$0xff]  ;;  %s316_s30 = smov 8  }
   0xf   :  { %v214_v8 = vld [vmem:[#allocation2] sm:$0xff] }
  0x10   :  { %v231_v9 = vld [vmem:[%s351_s2] ss:$0 sm:$0xff] }
  0x11   :  { %128 = vmatpush.bf16.msra.mxu0 %v221_v1 }
  0x15   :  { %129 = vmatpush.bf16.msra.mxu0 %v220_v2 }
  0x19   :  { %130 = vmatpush.bf16.msra.mxu0 %v219_v3 }
  0x1d   :  { %131 = vmatpush.bf16.msra.mxu0 %v218_v4 }
  0x21   :  { %132 = vmatpush.bf16.msra.mxu0 %v217_v5 }
  0x25   :  { %133 = vmatpush.bf16.msra.mxu0 %v216_v6 }
  0x29   :  { %134 = vmatpush.bf16.msra.mxu0 %v215_v7 }
  0x2c   :  { %135 = vmatmul.bf16.vlgmr.msra.gmra.mxu0 %v214_v8 }
  0xa9   :  { %v136_v10 = vpop.f32.mrf.mxu0 }
  0xaa   :  { %v154_v11 = vadd.f32 %v231_v9, %v136_v10 }
  0xac   :  { %156 = vst [vmem:[#allocation7] sm:$0xff] %v154_v11 }
  0xb1   :  { %v138_v12 = vpop.f32.mrf.mxu0 }
  0xb2   :  { %v155_v13 = vadd.f32 %v231_v9, %v138_v12 }
  0xb4   :  { %157 = vst [vmem:[#allocation7 + $0x8] sm:$0xff] %v155_v13 }
  0xb5   :  { %170 = dma.vmem_to_hbm [thread:$0]  %s163_s25, 256, %s165_s28, [#allocation4], %s315_s29, %s315_s29, %s316_s30  }
  0xb6   :  { %308 = dma.done.wait [#allocation4], 256  }
  0xb7   :  { %309 = vsyncadd [#allocation4], 4294967040 }
  0xb8   :  { %175 = vsyncpa [#allocation3], 1 }
  0xb9   :  { %176 = vsyncpa [#allocation6], 1 }
  0xba   :  { %177 = vsyncpa [#allocation4], 1 }

</bundles_post_ra>
